<compile_context>
chip_gen: v5e
topology: v5e:2x2
jax: 0.10.0
libtpu: 0.0.40
codegen_flags: <defaults>
</compile_context>

<pallas_src>
import functools

import jax
import jax.numpy as jnp
from jax import lax
from jax.experimental import pallas as pl
from jax.experimental.pallas import tpu as pltpu

_BN_EPS = 1e-5
_VMEM_LIMIT = 64 * 1024 * 1024


# -----------------------------------------------------------------------------
# In-kernel helpers
# -----------------------------------------------------------------------------
def _pw(w, b, x, relu):
    # 1x1 conv (+ folded BN) as an MXU matmul: (Cout, Cin) @ (Cin, M).
    y = jnp.dot(w, x.astype(w.dtype), preferred_element_type=jnp.float32) + b
    return jnp.maximum(y, 0.0) if relu else y


def _dw_strided_flat(phases, wtaps, *, k, s, Wo):
    """Stride-s 'same' depthwise conv on phase-decomposed, flattened activations.

    phases[r_h * s + r_w] is a (C, Mo) f32 array holding x[c, q*s + r_h, t*s + r_w]
    at flat position q*Wo + t (the stride-s phase decomposition).  Each kernel tap
    then reads ONE phase at a small static flat lane shift; row wrap falls into the
    zero side pads and only the column wrap needs a mask, applied once per kw group.
    For s == 1 this reduces to a plain stride-1 depthwise conv on the flat layout.
    """
    C, Mo = phases[0].shape
    p = k // 2
    amax = (p + s - 1) // s                 # max |block shift| of any tap
    P = amax * (Wo + 1)                     # zero side pad covers every shifted window
    if P > 0:
        zp = jnp.zeros((C, P), jnp.float32)
        padded = [jnp.concatenate([zp, ph, zp], axis=1) for ph in phases]
    else:
        padded = phases
    col = lax.broadcasted_iota(jnp.int32, (1, Mo), 1) % Wo

    acc = jnp.zeros((C, Mo), jnp.float32)
    for dw in range(k):                     # group taps by kw -> one column mask per group
        a_w = (dw - p) // s
        r_w = (dw - p) % s
        part = None
        for dh in range(k):
            a_h = (dh - p) // s
            r_h = (dh - p) % s
            off = a_h * Wo + a_w
            src = padded[r_h * s + r_w]
            tap = src[:, P + off:P + off + Mo]              # static lane-shifted window
            w_tap = wtaps[:, dh * k + dw:dh * k + dw + 1]   # (C, 1)
            term = tap * w_tap
            part = term if part is None else part + term
        if a_w != 0:                        # row overflow already lands in the zero pads
            cw = col + a_w
            part = jnp.where(jnp.logical_and(cw >= 0, cw < Wo), part, 0.0)
        acc = acc + part
    return acc


# -----------------------------------------------------------------------------
# Fused kernels (one grid step == one image).  Output row i of o_ref is
# [branch1[i] | branch2[i]] over 2*Mo lanes, so the outer reshape to NCHW
# produces the channel-shuffled (interleaved) order for free.
# -----------------------------------------------------------------------------
def _block_s1_kernel(x_ref, w1_ref, c1_ref, dww_ref, dwb_ref, w2_ref, c2_ref,
                     o_ref, *, k, W):
    # x_ref: (1, 2, C/2, M) -- channel halves pre-split by a free NCHW reshape.
    x1 = x_ref[0, 0]                                        # passthrough half
    x2 = x_ref[0, 1].astype(jnp.float32)                    # branch2 half

    h = _pw(w1_ref[...], c1_ref[...], x2, True)             # 1x1(+bn)+relu
    a = _dw_strided_flat([h], dww_ref[...], k=k, s=1, Wo=W) + dwb_ref[...]
    y2 = _pw(w2_ref[...], c2_ref[...], a, True)             # 1x1(+bn)+relu

    o_ref[0] = jnp.concatenate(
        [x1.astype(o_ref.dtype), y2.astype(o_ref.dtype)], axis=1)


def _block_sN_kernel(xp_ref, d1w_ref, d1b_ref, p1w_ref, p1b_ref,
                     w1_ref, c1_ref, dww_ref, dwb_ref, w2_ref, c2_ref,
                     o_ref, *, k, s, Wo):
    # xp_ref: (1, s*s, C, Mo) -- stride-s phase decomposition of the NCHW input.
    phases = [xp_ref[0, q].astype(jnp.float32) for q in range(s * s)]

    # branch1: kxk strided dw(+bn) -> 1x1(+bn)+relu
    a1 = _dw_strided_flat(phases, d1w_ref[...], k=k, s=s, Wo=Wo) + d1b_ref[...]
    y1 = _pw(p1w_ref[...], p1b_ref[...], a1, True)

    # branch2: 1x1(+bn)+relu (per phase) -> kxk strided dw(+bn) -> 1x1(+bn)+relu
    w1 = w1_ref[...]
    c1 = c1_ref[...]
    hph = [_pw(w1, c1, ph, True) for ph in phases]
    a2 = _dw_strided_flat(hph, dww_ref[...], k=k, s=s, Wo=Wo) + dwb_ref[...]
    y2 = _pw(w2_ref[...], c2_ref[...], a2, True)

    o_ref[0] = jnp.concatenate(
        [y1.astype(o_ref.dtype), y2.astype(o_ref.dtype)], axis=1)


# -----------------------------------------------------------------------------
# pallas_call wrappers
# -----------------------------------------------------------------------------
def _const_spec(shape):
    # Constant-index parameter block: single-buffered (no pipelining needed).
    return pl.BlockSpec(shape, lambda n: (0,) * len(shape),
                        pipeline_mode=pl.Buffered(1))


def _fused_block_s1(x4, params, *, k, W, ch, out_dtype):
    N, _, ch_in, M = x4.shape
    kern = functools.partial(_block_s1_kernel, k=k, W=W)
    in_specs = [pl.BlockSpec((1, 2, ch_in, M), lambda n: (n, 0, 0, 0))]
    in_specs += [_const_spec(p.shape) for p in params]
    return pl.pallas_call(
        kern,
        out_shape=jax.ShapeDtypeStruct((N, ch, 2 * M), out_dtype),
        grid_spec=pltpu.PrefetchScalarGridSpec(
            num_scalar_prefetch=0,
            grid=(N,),
            in_specs=in_specs,
            out_specs=pl.BlockSpec((1, ch, 2 * M), lambda n: (n, 0, 0)),
        ),
        compiler_params=pltpu.CompilerParams(
            dimension_semantics=("parallel",),
            vmem_limit_bytes=_VMEM_LIMIT),
    )(x4, *params)


def _fused_block_sN(xp, params, *, k, s, Wo, ch, out_dtype):
    N, nph, C, Mo = xp.shape
    kern = functools.partial(_block_sN_kernel, k=k, s=s, Wo=Wo)
    in_specs = [pl.BlockSpec((1, nph, C, Mo), lambda n: (n, 0, 0, 0))]
    in_specs += [_const_spec(p.shape) for p in params]
    return pl.pallas_call(
        kern,
        out_shape=jax.ShapeDtypeStruct((N, ch, 2 * Mo), out_dtype),
        grid_spec=pltpu.PrefetchScalarGridSpec(
            num_scalar_prefetch=0,
            grid=(N,),
            in_specs=in_specs,
            out_specs=pl.BlockSpec((1, ch, 2 * Mo), lambda n: (n, 0, 0)),
        ),
        compiler_params=pltpu.CompilerParams(
            dimension_semantics=("parallel",),
            vmem_limit_bytes=_VMEM_LIMIT),
    )(xp, *params)


# -----------------------------------------------------------------------------
# ShuffleBlockV2 module (deterministic params, inference-mode folded BN)
# -----------------------------------------------------------------------------
class ShuffleBlockV2:
    def __init__(self, input_channels, output_channels, kernel_size, stride, key,
                 mxu_dtype=jnp.float32):
        assert output_channels % 2 == 0
        assert kernel_size % 2 == 1, "odd kernel_size required ('same' padding)"
        if stride == 1:
            assert input_channels == output_channels, (
                "stride-1 ShuffleNetV2 unit requires input_channels == output_channels")
            assert input_channels % 2 == 0
        self.input_channels = input_channels
        self.output_channels = output_channels
        self.kernel_size = kernel_size
        self.stride = stride
        self.mxu_dtype = mxu_dtype

        in_c = input_channels // 2 if stride == 1 else input_channels
        out_c = output_channels // 2
        k = kernel_size
        keys = iter(jax.random.split(key, 32))

        def conv_w(cin, cout):
            return jax.random.normal(next(keys), (cin, cout), jnp.float32) / jnp.sqrt(
                jnp.float32(cin))

        def dw_w(c):
            return jax.random.normal(next(keys), (k * k, c), jnp.float32) / float(k)

        def bn(c):
            gamma = 1.0 + 0.1 * jax.random.normal(next(keys), (c,), jnp.float32)
            beta = 0.1 * jax.random.normal(next(keys), (c,), jnp.float32)
            mean = 0.1 * jax.random.normal(next(keys), (c,), jnp.float32)
            var = 0.5 + jax.random.uniform(next(keys), (c,), jnp.float32)
            scale = gamma / jnp.sqrt(var + _BN_EPS)
            bias = beta - mean * scale
            return scale, bias

        if stride != 1:
            self.b1_dw_w = dw_w(input_channels)
            self.b1_dw_s, self.b1_dw_b = bn(input_channels)
            self.b1_pw_w = conv_w(input_channels, out_c)
            self.b1_pw_s, self.b1_pw_b = bn(out_c)
        self.b2_pw1_w = conv_w(in_c, out_c)
        self.b2_pw1_s, self.b2_pw1_b = bn(out_c)
        self.b2_dw_w = dw_w(out_c)
        self.b2_dw_s, self.b2_dw_b = bn(out_c)
        self.b2_pw2_w = conv_w(out_c, out_c)
        self.b2_pw2_s, self.b2_pw2_b = bn(out_c)

        # ---- fold BN into conv weights/biases (inference).  1x1 weights are stored
        #      in mxu_dtype (e.g. bf16); dw weights / biases stay f32 (VPU path).
        def fold_pw(w, scale, b):    # (Cin,Cout) conv + BN -> (Cout,Cin), (Cout,1)
            return (scale[:, None] * w.T).astype(mxu_dtype), b[:, None]

        def fold_dw(w, scale, b):    # (k*k,C) depthwise + BN -> (C,k*k), (C,1)
            return w.T * scale[:, None], b[:, None]

        w1f, c1 = fold_pw(self.b2_pw1_w, self.b2_pw1_s, self.b2_pw1_b)
        dwf, dwb = fold_dw(self.b2_dw_w, self.b2_dw_s, self.b2_dw_b)
        w2f, c2 = fold_pw(self.b2_pw2_w, self.b2_pw2_s, self.b2_pw2_b)
        self._branch2 = (w1f, c1, dwf, dwb, w2f, c2)

        if stride != 1:
            d1f, d1b = fold_dw(self.b1_dw_w, self.b1_dw_s, self.b1_dw_b)
            p1f, p1b = fold_pw(self.b1_pw_w, self.b1_pw_s, self.b1_pw_b)
            self._branch1 = (d1f, d1b, p1f, p1b)

    def __call__(self, x_nchw):
        N, C, H, W = x_nchw.shape
        assert C == self.input_channels
        k, s = self.kernel_size, self.stride
        pad = k // 2
        Ho = (H + 2 * pad - k) // s + 1
        Wo = (W + 2 * pad - k) // s + 1
        co = self.output_channels
        ch = co // 2
        out_dtype = x_nchw.dtype

        if s == 1:
            M = H * W
            x4 = x_nchw.reshape(N, 2, C // 2, M)            # free reshape (channel split)
            out = _fused_block_s1(x4, self._branch2, k=k, W=W, ch=ch,
                                  out_dtype=out_dtype)
            return out.reshape(N, co, H, W)                 # free interleaving reshape

        assert H % s == 0 and W % s == 0 and Ho == H // s and Wo == W // s, (
            "stride>1 path requires spatial dims divisible by the stride")
        # Space-to-depth: one XLA pass over the input; the strided dw conv then only
        # needs static lane shifts of the (C, Ho*Wo) phase slabs inside the kernel.
        xr = x_nchw.reshape(N, C, Ho, s, Wo, s)
        xp = jnp.transpose(xr, (0, 3, 5, 1, 2, 4)).reshape(N, s * s, C, Ho * Wo)
        params = self._branch1 + self._branch2
        out = _fused_block_sN(xp, params, k=k, s=s, Wo=Wo, ch=ch,
                              out_dtype=out_dtype)
        return out.reshape(N, co, Ho, Wo)                   # free interleaving reshape


# -----------------------------------------------------------------------------
# Pure-JAX reference (verification only)
# -----------------------------------------------------------------------------
def _ref_pw(x, w, scale, bias, relu):
    y = jnp.einsum("nhwc,cd->nhwd", x, w, precision=lax.Precision.HIGHEST)
    y = y * scale + bias
    return jnp.maximum(y, 0.0) if relu else y


def _ref_dw(x, w, scale, bias, k, stride):
    C = x.shape[-1]
    kern = w.reshape(k, k, C)[:, :, None, :]
    y = lax.conv_general_dilated(
        x, kern, (stride, stride), [(k // 2, k // 2)] * 2,
        dimension_numbers=("NHWC", "HWIO", "NHWC"),
        feature_group_count=C, precision=lax.Precision.HIGHEST)
    return y * scale + bias


def reference_forward(blk, x_nchw):
    k, s = blk.kernel_size, blk.stride
    x = jnp.transpose(x_nchw, (0, 2, 3, 1))
    if s == 1:
        c = x.shape[-1]
        x1, x2 = x[..., : c // 2], x[..., c // 2:]
    else:
        x1 = _ref_dw(x, blk.b1_dw_w, blk.b1_dw_s, blk.b1_dw_b, k, s)
        x1 = _ref_pw(x1, blk.b1_pw_w, blk.b1_pw_s, blk.b1_pw_b, True)
        x2 = x
    y2 = _ref_pw(x2, blk.b2_pw1_w, blk.b2_pw1_s, blk.b2_pw1_b, True)
    y2 = _ref_dw(y2, blk.b2_dw_w, blk.b2_dw_s, blk.b2_dw_b, k, s)
    y2 = _ref_pw(y2, blk.b2_pw2_w, blk.b2_pw2_s, blk.b2_pw2_b, True)
    n, h, w, c2 = x1.shape
    y = jnp.stack([x1, y2], axis=-1).reshape(n, h, w, 2 * c2)
    return jnp.transpose(y, (0, 3, 1, 2))


if __name__ == "__main__":
    key = jax.random.PRNGKey(0)
    k_x, k_p1, k_p2 = jax.random.split(key, 3)
    x = jax.random.normal(k_x, (2, 8, 16, 16), jnp.float32)   # NCHW, like PyTorch

    # stride=1 block (channel split + branch2 + channel shuffle), f32 MXU path
    blk1 = ShuffleBlockV2(8, 8, 3, 1, k_p1)
    out1 = jax.block_until_ready(blk1(x))
    assert out1.shape == (2, 8, 16, 16), out1.shape
    ref1 = reference_forward(blk1, x)
    assert jnp.allclose(out1, ref1, atol=1e-3, rtol=1e-3), \
        float(jnp.max(jnp.abs(out1 - ref1)))

    # stride=2 block (both branches, spatial downsample), bf16 MXU path
    blk2 = ShuffleBlockV2(8, 16, 3, 2, k_p2, mxu_dtype=jnp.bfloat16)
    out2 = jax.block_until_ready(blk2(x))
    assert out2.shape == (2, 16, 8, 8), out2.shape
    ref2 = reference_forward(blk2, x)
    assert jnp.allclose(out2, ref2, atol=1e-1, rtol=1e-1), \
        float(jnp.max(jnp.abs(out2 - ref2)))

    print("KERNEL_OK")
</pallas_src>

<mosaic_0001>
module attributes {stable_mosaic.version = 11 : i64} {
  func.func @_block_s1_kernel(%arg0: i32, %arg1: memref<1x2x4x256xf32, #tpu.memory_space<vmem>>, %arg2: memref<4x4xf32, #tpu.memory_space<vmem>>, %arg3: memref<4x1xf32, #tpu.memory_space<vmem>>, %arg4: memref<4x9xf32, #tpu.memory_space<vmem>>, %arg5: memref<4x1xf32, #tpu.memory_space<vmem>>, %arg6: memref<4x4xf32, #tpu.memory_space<vmem>>, %arg7: memref<4x1xf32, #tpu.memory_space<vmem>>, %arg8: memref<1x4x512xf32, #tpu.memory_space<vmem>>) attributes {dimension_semantics = [#tpu.dimension_semantics<parallel>], iteration_bounds = array<i64: 2>, scalar_prefetch = 0 : i64, scratch_operands = 0 : i64, tpu.core_type = #tpu.core_type<tc>, window_params = [{transform_indices = @transform_0, window_bounds = array<i64: 1, 2, 4, 256>}, {pipeline_mode = #tpu.pipeline_mode<synchronous>, transform_indices = @transform_1, window_bounds = array<i64: 4, 4>}, {pipeline_mode = #tpu.pipeline_mode<synchronous>, transform_indices = @transform_2, window_bounds = array<i64: 4, 1>}, {pipeline_mode = #tpu.pipeline_mode<synchronous>, transform_indices = @transform_3, window_bounds = array<i64: 4, 9>}, {pipeline_mode = #tpu.pipeline_mode<synchronous>, transform_indices = @transform_4, window_bounds = array<i64: 4, 1>}, {pipeline_mode = #tpu.pipeline_mode<synchronous>, transform_indices = @transform_5, window_bounds = array<i64: 4, 4>}, {pipeline_mode = #tpu.pipeline_mode<synchronous>, transform_indices = @transform_6, window_bounds = array<i64: 4, 1>}, {transform_indices = @transform_7, window_bounds = array<i64: 1, 4, 512>}]} {
    %c0 = arith.constant 0 : index
    %c0_0 = arith.constant 0 : index
    %c0_1 = arith.constant 0 : index
    %c0_2 = arith.constant 0 : index
    %0 = vector.load %arg1[%c0, %c0_0, %c0_1, %c0_2] : memref<1x2x4x256xf32, #tpu.memory_space<vmem>>, vector<1x1x4x256xf32>
    %1 = vector.shape_cast %0 : vector<1x1x4x256xf32> to vector<4x256xf32>
    %c0_3 = arith.constant 0 : index
    %c1 = arith.constant 1 : index
    %c0_4 = arith.constant 0 : index
    %c0_5 = arith.constant 0 : index
    %2 = vector.load %arg1[%c0_3, %c1, %c0_4, %c0_5] : memref<1x2x4x256xf32, #tpu.memory_space<vmem>>, vector<1x1x4x256xf32>
    %3 = vector.shape_cast %2 : vector<1x1x4x256xf32> to vector<4x256xf32>
    %c0_6 = arith.constant 0 : index
    %c0_7 = arith.constant 0 : index
    %4 = vector.load %arg2[%c0_6, %c0_7] : memref<4x4xf32, #tpu.memory_space<vmem>>, vector<4x4xf32>
    %c0_8 = arith.constant 0 : index
    %c0_9 = arith.constant 0 : index
    %5 = vector.load %arg3[%c0_8, %c0_9] : memref<4x1xf32, #tpu.memory_space<vmem>>, vector<4x1xf32>
    %cst = arith.constant dense<0.000000e+00> : vector<4x256xf32>
    %6 = tpu.matmul %4, %3, %cst {dimension_numbers = #tpu.dot_dimension_numbers<[1], [0], [0], [1], [0, 0, 1, 1], [], []>} : vector<4x4xf32>, vector<4x256xf32>, vector<4x256xf32> -> vector<4x256xf32>
    %7 = vector.broadcast %5 : vector<4x1xf32> to vector<4x256xf32>
    %8 = arith.addf %6, %7 : vector<4x256xf32>
    %cst_10 = arith.constant 0.000000e+00 : f32
    %9 = vector.broadcast %cst_10 : f32 to vector<4x256xf32>
    %10 = arith.maximumf %8, %9 : vector<4x256xf32>
    %c0_11 = arith.constant 0 : index
    %c0_12 = arith.constant 0 : index
    %11 = vector.load %arg4[%c0_11, %c0_12] : memref<4x9xf32, #tpu.memory_space<vmem>>, vector<4x9xf32>
    %cst_13 = arith.constant 0.000000e+00 : f32
    %12 = vector.broadcast %cst_13 : f32 to vector<4x17xf32>
    %13 = tpu.concatenate %12, %10, %12 in 1 : vector<4x17xf32>, vector<4x256xf32>, vector<4x17xf32> -> vector<4x290xf32>
    %14 = tpu.iota {dimensions = array<i32: 1>} : vector<1x256xi32>
    %c16_i32 = arith.constant 16 : i32
    %c0_i32 = arith.constant 0 : i32
    %15 = arith.cmpi eq, %c16_i32, %c0_i32 : i32
    %c1_i32 = arith.constant 1 : i32
    %16 = arith.select %15, %c1_i32, %c16_i32 : i32
    %17 = vector.broadcast %16 : i32 to vector<1x256xi32>
    %18 = arith.remsi %14, %17 : vector<1x256xi32>
    %c0_i32_14 = arith.constant 0 : i32
    %19 = vector.broadcast %c0_i32_14 : i32 to vector<1x256xi32>
    %20 = arith.cmpi ne, %18, %19 : vector<1x256xi32>
    %c0_i32_15 = arith.constant 0 : i32
    %21 = vector.broadcast %c0_i32_15 : i32 to vector<1x256xi32>
    %22 = arith.cmpi slt, %18, %21 : vector<1x256xi32>
    %c0_i32_16 = arith.constant 0 : i32
    %23 = arith.cmpi slt, %16, %c0_i32_16 : i32
    %24 = vector.broadcast %23 : i1 to vector<1x256xi1>
    %25 = vector.broadcast %24 : vector<1x256xi1> to vector<1x256xi1>
    %26 = arith.xori %22, %25 : vector<1x256xi1>
    %27 = arith.andi %26, %20 : vector<1x256xi1>
    %28 = vector.broadcast %16 : i32 to vector<1x256xi32>
    %29 = arith.addi %18, %28 : vector<1x256xi32>
    %30 = arith.select %27, %29, %18 : vector<1x256xi1>, vector<1x256xi32>
    %cst_17 = arith.constant 0.000000e+00 : f32
    %31 = vector.broadcast %cst_17 : f32 to vector<4x256xf32>
    %32 = vector.extract_strided_slice %13 {offsets = [0, 0], sizes = [4, 256], strides = [1, 1]} : vector<4x290xf32> to vector<4x256xf32>
    %33 = vector.extract_strided_slice %11 {offsets = [0, 0], sizes = [4, 1], strides = [1, 1]} : vector<4x9xf32> to vector<4x1xf32>
    %34 = vector.broadcast %33 : vector<4x1xf32> to vector<4x256xf32>
    %35 = arith.mulf %32, %34 : vector<4x256xf32>
    %36 = vector.extract_strided_slice %13 {offsets = [0, 16], sizes = [4, 256], strides = [1, 1]} : vector<4x290xf32> to vector<4x256xf32>
    %37 = vector.extract_strided_slice %11 {offsets = [0, 3], sizes = [4, 1], strides = [1, 1]} : vector<4x9xf32> to vector<4x1xf32>
    %38 = vector.broadcast %37 : vector<4x1xf32> to vector<4x256xf32>
    %39 = arith.mulf %36, %38 : vector<4x256xf32>
    %40 = arith.addf %35, %39 : vector<4x256xf32>
    %41 = vector.extract_strided_slice %13 {offsets = [0, 32], sizes = [4, 256], strides = [1, 1]} : vector<4x290xf32> to vector<4x256xf32>
    %42 = vector.extract_strided_slice %11 {offsets = [0, 6], sizes = [4, 1], strides = [1, 1]} : vector<4x9xf32> to vector<4x1xf32>
    %43 = vector.broadcast %42 : vector<4x1xf32> to vector<4x256xf32>
    %44 = arith.mulf %41, %43 : vector<4x256xf32>
    %45 = arith.addf %40, %44 : vector<4x256xf32>
    %c-1_i32 = arith.constant -1 : i32
    %46 = vector.broadcast %c-1_i32 : i32 to vector<1x256xi32>
    %47 = arith.addi %30, %46 : vector<1x256xi32>
    %c0_i32_18 = arith.constant 0 : i32
    %48 = vector.broadcast %c0_i32_18 : i32 to vector<1x256xi32>
    %49 = arith.cmpi sge, %47, %48 : vector<1x256xi32>
    %c16_i32_19 = arith.constant 16 : i32
    %50 = vector.broadcast %c16_i32_19 : i32 to vector<1x256xi32>
    %51 = arith.cmpi slt, %47, %50 : vector<1x256xi32>
    %52 = arith.andi %49, %51 : vector<1x256xi1>
    %cst_20 = arith.constant 0.000000e+00 : f32
    %53 = vector.shape_cast %52 : vector<1x256xi1> to vector<1x256xi1>
    %54 = vector.broadcast %53 : vector<1x256xi1> to vector<4x256xi1>
    %55 = vector.broadcast %cst_20 : f32 to vector<4x256xf32>
    %56 = arith.select %54, %45, %55 : vector<4x256xi1>, vector<4x256xf32>
    %57 = arith.addf %31, %56 : vector<4x256xf32>
    %58 = vector.extract_strided_slice %13 {offsets = [0, 1], sizes = [4, 256], strides = [1, 1]} : vector<4x290xf32> to vector<4x256xf32>
    %59 = vector.extract_strided_slice %11 {offsets = [0, 1], sizes = [4, 1], strides = [1, 1]} : vector<4x9xf32> to vector<4x1xf32>
    %60 = vector.broadcast %59 : vector<4x1xf32> to vector<4x256xf32>
    %61 = arith.mulf %58, %60 : vector<4x256xf32>
    %62 = vector.extract_strided_slice %13 {offsets = [0, 17], sizes = [4, 256], strides = [1, 1]} : vector<4x290xf32> to vector<4x256xf32>
    %63 = vector.extract_strided_slice %11 {offsets = [0, 4], sizes = [4, 1], strides = [1, 1]} : vector<4x9xf32> to vector<4x1xf32>
    %64 = vector.broadcast %63 : vector<4x1xf32> to vector<4x256xf32>
    %65 = arith.mulf %62, %64 : vector<4x256xf32>
    %66 = arith.addf %61, %65 : vector<4x256xf32>
    %67 = vector.extract_strided_slice %13 {offsets = [0, 33], sizes = [4, 256], strides = [1, 1]} : vector<4x290xf32> to vector<4x256xf32>
    %68 = vector.extract_strided_slice %11 {offsets = [0, 7], sizes = [4, 1], strides = [1, 1]} : vector<4x9xf32> to vector<4x1xf32>
    %69 = vector.broadcast %68 : vector<4x1xf32> to vector<4x256xf32>
    %70 = arith.mulf %67, %69 : vector<4x256xf32>
    %71 = arith.addf %66, %70 : vector<4x256xf32>
    %72 = arith.addf %57, %71 : vector<4x256xf32>
    %73 = vector.extract_strided_slice %13 {offsets = [0, 2], sizes = [4, 256], strides = [1, 1]} : vector<4x290xf32> to vector<4x256xf32>
    %74 = vector.extract_strided_slice %11 {offsets = [0, 2], sizes = [4, 1], strides = [1, 1]} : vector<4x9xf32> to vector<4x1xf32>
    %75 = vector.broadcast %74 : vector<4x1xf32> to vector<4x256xf32>
    %76 = arith.mulf %73, %75 : vector<4x256xf32>
    %77 = vector.extract_strided_slice %13 {offsets = [0, 18], sizes = [4, 256], strides = [1, 1]} : vector<4x290xf32> to vector<4x256xf32>
    %78 = vector.extract_strided_slice %11 {offsets = [0, 5], sizes = [4, 1], strides = [1, 1]} : vector<4x9xf32> to vector<4x1xf32>
    %79 = vector.broadcast %78 : vector<4x1xf32> to vector<4x256xf32>
    %80 = arith.mulf %77, %79 : vector<4x256xf32>
    %81 = arith.addf %76, %80 : vector<4x256xf32>
    %82 = vector.extract_strided_slice %13 {offsets = [0, 34], sizes = [4, 256], strides = [1, 1]} : vector<4x290xf32> to vector<4x256xf32>
    %83 = vector.extract_strided_slice %11 {offsets = [0, 8], sizes = [4, 1], strides = [1, 1]} : vector<4x9xf32> to vector<4x1xf32>
    %84 = vector.broadcast %83 : vector<4x1xf32> to vector<4x256xf32>
    %85 = arith.mulf %82, %84 : vector<4x256xf32>
    %86 = arith.addf %81, %85 : vector<4x256xf32>
    %c1_i32_21 = arith.constant 1 : i32
    %87 = vector.broadcast %c1_i32_21 : i32 to vector<1x256xi32>
    %88 = arith.addi %30, %87 : vector<1x256xi32>
    %c0_i32_22 = arith.constant 0 : i32
    %89 = vector.broadcast %c0_i32_22 : i32 to vector<1x256xi32>
    %90 = arith.cmpi sge, %88, %89 : vector<1x256xi32>
    %c16_i32_23 = arith.constant 16 : i32
    %91 = vector.broadcast %c16_i32_23 : i32 to vector<1x256xi32>
    %92 = arith.cmpi slt, %88, %91 : vector<1x256xi32>
    %93 = arith.andi %90, %92 : vector<1x256xi1>
    %cst_24 = arith.constant 0.000000e+00 : f32
    %94 = vector.shape_cast %93 : vector<1x256xi1> to vector<1x256xi1>
    %95 = vector.broadcast %94 : vector<1x256xi1> to vector<4x256xi1>
    %96 = vector.broadcast %cst_24 : f32 to vector<4x256xf32>
    %97 = arith.select %95, %86, %96 : vector<4x256xi1>, vector<4x256xf32>
    %98 = arith.addf %72, %97 : vector<4x256xf32>
    %c0_25 = arith.constant 0 : index
    %c0_26 = arith.constant 0 : index
    %99 = vector.load %arg5[%c0_25, %c0_26] : memref<4x1xf32, #tpu.memory_space<vmem>>, vector<4x1xf32>
    %100 = vector.broadcast %99 : vector<4x1xf32> to vector<4x256xf32>
    %101 = arith.addf %98, %100 : vector<4x256xf32>
    %c0_27 = arith.constant 0 : index
    %c0_28 = arith.constant 0 : index
    %102 = vector.load %arg6[%c0_27, %c0_28] : memref<4x4xf32, #tpu.memory_space<vmem>>, vector<4x4xf32>
    %c0_29 = arith.constant 0 : index
    %c0_30 = arith.constant 0 : index
    %103 = vector.load %arg7[%c0_29, %c0_30] : memref<4x1xf32, #tpu.memory_space<vmem>>, vector<4x1xf32>
    %cst_31 = arith.constant dense<0.000000e+00> : vector<4x256xf32>
    %104 = tpu.matmul %102, %101, %cst_31 {dimension_numbers = #tpu.dot_dimension_numbers<[1], [0], [0], [1], [0, 0, 1, 1], [], []>} : vector<4x4xf32>, vector<4x256xf32>, vector<4x256xf32> -> vector<4x256xf32>
    %105 = vector.broadcast %103 : vector<4x1xf32> to vector<4x256xf32>
    %106 = arith.addf %104, %105 : vector<4x256xf32>
    %cst_32 = arith.constant 0.000000e+00 : f32
    %107 = vector.broadcast %cst_32 : f32 to vector<4x256xf32>
    %108 = arith.maximumf %106, %107 : vector<4x256xf32>
    %109 = tpu.concatenate %1, %108 in 1 : vector<4x256xf32>, vector<4x256xf32> -> vector<4x512xf32>
    %c0_33 = arith.constant 0 : index
    %c0_34 = arith.constant 0 : index
    %c0_35 = arith.constant 0 : index
    %110 = vector.load %arg8[%c0_33, %c0_34, %c0_35] : memref<1x4x512xf32, #tpu.memory_space<vmem>>, vector<1x4x512xf32>
    %111 = vector.shape_cast %110 : vector<1x4x512xf32> to vector<4x512xf32>
    %112 = vector.shape_cast %109 : vector<4x512xf32> to vector<1x4x512xf32>
    tpu.vector_store %arg8[%c0_33, %c0_34, %c0_35], %112 {strides = array<i32>} : memref<1x4x512xf32, #tpu.memory_space<vmem>>, vector<1x4x512xf32>,
    return
  }
  func.func @transform_0(%arg0: i32) -> (i32, i32, i32, i32) {
    %c0_i32 = arith.constant 0 : i32
    %c0_i32_0 = arith.constant 0 : i32
    %c0_i32_1 = arith.constant 0 : i32
    %c0_i32_2 = arith.constant 0 : i32
    return %arg0, %c0_i32, %c0_i32_0, %c0_i32_1 : i32, i32, i32, i32
  }
  func.func @transform_1(%arg0: i32) -> (i32, i32) {
    %c0_i32 = arith.constant 0 : i32
    %c0_i32_0 = arith.constant 0 : i32
    %c0_i32_1 = arith.constant 0 : i32
    return %c0_i32, %c0_i32_0 : i32, i32
  }
  func.func @transform_2(%arg0: i32) -> (i32, i32) {
    %c0_i32 = arith.constant 0 : i32
    %c0_i32_0 = arith.constant 0 : i32
    %c0_i32_1 = arith.constant 0 : i32
    return %c0_i32, %c0_i32_0 : i32, i32
  }
  func.func @transform_3(%arg0: i32) -> (i32, i32) {
    %c0_i32 = arith.constant 0 : i32
    %c0_i32_0 = arith.constant 0 : i32
    %c0_i32_1 = arith.constant 0 : i32
    return %c0_i32, %c0_i32_0 : i32, i32
  }
  func.func @transform_4(%arg0: i32) -> (i32, i32) {
    %c0_i32 = arith.constant 0 : i32
    %c0_i32_0 = arith.constant 0 : i32
    %c0_i32_1 = arith.constant 0 : i32
    return %c0_i32, %c0_i32_0 : i32, i32
  }
  func.func @transform_5(%arg0: i32) -> (i32, i32) {
    %c0_i32 = arith.constant 0 : i32
    %c0_i32_0 = arith.constant 0 : i32
    %c0_i32_1 = arith.constant 0 : i32
    return %c0_i32, %c0_i32_0 : i32, i32
  }
  func.func @transform_6(%arg0: i32) -> (i32, i32) {
    %c0_i32 = arith.constant 0 : i32
    %c0_i32_0 = arith.constant 0 : i32
    %c0_i32_1 = arith.constant 0 : i32
    return %c0_i32, %c0_i32_0 : i32, i32
  }
  func.func @transform_7(%arg0: i32) -> (i32, i32, i32) {
    %c0_i32 = arith.constant 0 : i32
    %c0_i32_0 = arith.constant 0 : i32
    %c0_i32_1 = arith.constant 0 : i32
    return %arg0, %c0_i32, %c0_i32_0 : i32, i32, i32
  }
}

</mosaic_0001>

<bundles_post_ra>
// kernel: tpu_custom_call.1
= control target key start
LH: loop header
LB: loop body
LE: loop exit
PB: predicated region body
PF: predicated region fallthrough
CT: control target
= control target key end

     0   :  { %12 = vsyncpa [#allocation3], 0  ;;  %s1279_s0 = inlined_call_operand.hbm [shape: f32[2,2,4,256], index: 0, kind: input, shape index: {}]   ;;  %s1280_s1 = inlined_call_operand.vmem [shape: f32[4,4], index: 1, kind: input, shape index: {}]   ;;  %s1281_s2 = inlined_call_operand.vmem [shape: f32[4,1], index: 2, kind: input, shape index: {}]   ;;  %s1282_s3 = inlined_call_operand.vmem [shape: f32[4,9], index: 3, kind: input, shape index: {}]   ;;  %s1283_s4 = inlined_call_operand.vmem [shape: f32[4,1], index: 4, kind: input, shape index: {}]   ;;  %s1284_s5 = inlined_call_operand.vmem [shape: f32[4,4], index: 5, kind: input, shape index: {}]   ;;  %s1285_s6 = inlined_call_operand.vmem [shape: f32[4,1], index: 6, kind: input, shape index: {}]   ;;  %s1286_s7 = inlined_call_operand.hbm [shape: f32[2,4,512], index: 7, kind: output, shape index: {}]  }
   0x1   :  { %14 = vsyncpa [#allocation3 + $0x1], 0 }
   0x2   :  { %15 = vsyncpa [#allocation4], 0 }
   0x3   :  { %17 = vsyncpa [#allocation4 + $0x1], 0  ;;  %s1049_s24 = smov 0   ;;  %s1051_s25 = smov 0  }
   0x4   :  { %s1053_s26 = smov 0   ;;  %s1055_s27 = smov 0  }
   0x5 LB: > { %s1070_s28 = sadd.s32 4294967295, %s991_s27   ;;  %s797_s29 = sadd.s32 4294967294, %s991_s27   ;;  %s991_s27 = sphi %s1055_s27, %s1298_s27   ;;  %s987_s26 = sphi %s1053_s26, %s1297_s26   ;;  %s983_s25 = sphi %s1051_s25, %s1296_s25   ;;  %s979_s24 = sphi %s1049_s24, %s1295_s24  }
   0x6   : > { %s1074_s30 = sadd.s32 1, %s991_s27   ;;  %s30_s8 = sadd.s32 1, %s987_s26 }
   0x7   : > { %s27_s9 = ssub.s32 %s991_s27, %s1074_s30  ;;  %p37_p0 = scmp.ne.s32.totalorder %s987_s26, %s983_s25 }
   0x8   : > { %p28_p1 = scmp.eq.s32.totalorder %s27_s9, 0  ;;  %p38_p2 = scmp.eq.s32.totalorder %s991_s27, 0 }
   0x9   : > { %p43_p3 = scmp.ne.s32.totalorder %s983_s25, %s979_s24  ;;  %p44_p4 = scmp.eq.s32.totalorder %s1070_s28, 0 }
   0xa   : > { %s1086_s10 = scalar_select %p28_p1, %s987_s26, %s30_s8  }
   0xb   : > { %p1088_p5 = por %p38_p2, %p37_p0  ;;  %p1092_p6 = por %p44_p4, %p43_p3 }
   0xc   : > { %1287 = sst [smem:[#allocation8_spill]] %s1086_s10  ;;  %p193_p7 = scmp.eq.s32.totalorder %s1070_s28, 1 }
   0xd   : > { %p199_p8 = scmp.eq.s32.totalorder %s797_s29, 1  ;;  %p834_p10 = scmp.lt.s32.totalorder %s991_s27, 2 }
   0xe   : > { %p1099_p11 = por %p193_p7, %p37_p0  ;;  %s237_s15 = sand.u32 1, %s987_s26  }
   0xf   : > { %p1103_p12 = por %p199_p8, %p43_p3  ;;  %s820_s16 = sshll.u32 %s991_s27, 4 }
  0x10   : > { %s800_s17 = sshll.u32 %s237_s15, 4  ;;  %s246_s20 = scalar_lea.hbm %s1279_s0, %s820_s16 }
  0x11   : > { %s247_s21 = sshll.u32 %s246_s20, 4  ;;  %s241_s22 = scalar_lea.vmem [#allocation2], %s800_s17  ;;  %s248_s21 = int_to_ptr.hbm [resolvable:$true] %s247_s21 }
  0x12   : > { %s249_s23 = sshll.u32 %s241_s22, 4  ;;  %p1114_p13 = pnand %p834_p10, %p1088_p5  ;;  %s250_s23 = int_to_ptr.vmem [resolvable:$true] %s249_s23 }
  0x13   : > { %p803_p0 = scmp.ge.s32.totalorder %s991_s27, 1  ;;  %p257_p1 = scmp.lt.s32.totalorder %s991_s27, 3 }
  0x14   : > { %s238_s8 = scalar_lea.sflag [#allocation3], %s237_s15  ;;  %s895_s9 = sshra.s32 %s248_s21, 4  ;;  %s896_s9 = int_to_ptr.hbm [resolvable:$true] %s895_s9 }
  0x15   : > { %s897_s10 = scalar_lea.hbm %s896_s9, 16  ;;  %p899_p3 = pneg %p1114_p13 }
  0x16   : > { %p898_p2 = scmp.ne.s32.totalorder %s896_s9, %s897_s10  ;;  %s902_s11 = scalar_lea.hbm %s1279_s0, 32 }
  0x17   : > { %p903_p5 = scmp.lt.s32.totalorder %s896_s9, %s1279_s0  ;;  %p904_p8 = scmp.lt.s32.totalorder %s902_s11, %s897_s10 }
  0x18   : > { %p900_p4 = pnand %p899_p3, %p898_p2 }
  0x19   : > { %p905_p10 = por %p904_p8, %p903_p5 }
  0x1a   : > { %p901_p7 = pneg %p900_p4 }
  0x1c   : > { %p906_p9 = pnand %p905_p10, %p901_p7 }
  0x1e   : > { %909 = shalt.err (!%p906_p9)
}
  0x1f   : > { %s993_s15 = smov 128   ;;  %s994_s20 = smov 8  }
  0x20   : > { %829 = dma.hbm_to_vmem [thread:$0]  (!%p1114_p13), %s248_s21, 256, %s250_s23, %s238_s8, %s993_s15, %s993_s15, %s994_s20  }
  0x21   : > { %p258_p2 = pnand %p803_p0, %p257_p1 }
  0x22   : > { %s1135_s22 = sand.u32 (!%p258_p2), 1, %s983_s25  }
  0x23   : > { %261 = sbr.rel (%p258_p2) target bundleno = 711 (0x2c7), region = 48  ;;  %s804_s10 = sshll.u32 (!%p258_p2), %s1135_s22, 4 }
  0x24   : > { %s264_s9 = scalar_lea.sflag (!%p258_p2), [#allocation3], %s1135_s22  ;;  %s267_s16 = scalar_lea.vmem (!%p258_p2), [#allocation2], %s804_s10 }
  0x28   : > { %970 = dma.done.wait (%p1092_p6), %s264_s9, 256  }
  0x29   : > { %972 = vsyncadd (%p1092_p6), %s264_s9, 4294967040  ;;  %v995_v0 = vmov 0   ;;  %v996_v1 = vmov 4   ;;  %v806_v2 = vld [vmem:[%s267_s16 + $0x8] sm:$0xff]  ;;  %vm317_vm0 = vcmask 1043456   ;;  %v299_v5 = vld [vmem:[%s267_s16] sm:$0xff] }
  0x2a   : > { %884 = vset.pattern.permute.xlu0 %v995_v0  ;;  %885 = vset.pattern.permute.xlu1 %v996_v1  ;;  %310 = vst [vmem:[#allocation1] ss:$2 sm:$0xff] %v806_v2  ;;  %v303_v3 = vld [vmem:[%s1281_s2] sm:$0xf]  ;;  %vm313_vm1 = vcmask 31744   ;;  %v997_v9 = vmov 5  }
  0x2b   : > { %v1151_v4 = vld [vmem:[%s1282_s3] sm:$0xf]  ;;  %306 = vperm.xlu0 %884, %v303_v3   ;;  %886 = vset.pattern.permute.xlu2 %v997_v9  ;;  %v998_v10 = vmov 3   ;;  %v999_v11 = vmov 8   ;;  %v1000_v12 = vmov 7   ;;  %v1001_v13 = vmov 1  }
  0x2c   : > { %482 = vperm.xlu1 %885, %v1151_v4   ;;  %v302_v6 = vld [vmem:[%s1280_s1] sm:$0xf]  ;;  %553 = vperm.xlu2 %886, %v1151_v4   ;;  %s1002_s11 = smov 17   ;;  %v1003_v21 = vmov 6   ;;  %v1004_v22 = vmov 2   ;;  %vm371_vm2 = vcmask 138240  }
  0x2d   : > { %s1005_s18 = smov 112   ;;  %s1006_s19 = smov 96   ;;  %vm428_vm3 = vcmask 916480   ;;  %vm451_vm4 = vcmask 785408   ;;  %vm538_vm5 = vcmask 1039360   ;;  %vm621_vm7 = vcmask 1031168  }
  0x2e   : > { %s1007_s15 = smov 127   ;;  %s1008_s20 = smov 126  }
  0x2f   : > { %s298_s12 = scalar_lea.vmem [#allocation5], %s804_s10  ;;  %s821_s17 = sshll.u32 %s1070_s28, 4 }
  0x30   : > { %s711_s10 = scalar_lea.sflag [#allocation4], %s1135_s22  ;;  %s945_s23 = scalar_lea.hbm %s1286_s7, 32 }
  0x31   : > { %v311_v7 = vld.sshfl [vmem:[#allocation1] sm:$0xff pattern:$0x75316420]  ;;  %v312_v8 = vld.sshfl [vmem:[#allocation1 + $0x8] sm:$0xff pattern:$0x75316420] }
  0x32   : > { %807 = vmatpush.msk.msra.mxu0 %vm317_vm0, %v311_v7  ;;  %809 = vmatpush.msk.msra.mxu1 %vm317_vm0, %v312_v8  ;;  %697 = vst [vmem:[#allocation1] ss:$2 sm:$0xff] %v299_v5 }
  0x33   : > { %808 = vmatmul.msk.f32.vlgmr.msra.gmra.mxu0 %vm313_vm1, %v302_v6  ;;  %810 = vmatmul.msk.f32.vlgmr.msra.gmra.mxu1 %vm313_vm1, %v302_v6 }
  0x34   : > { %889 = vset.pattern.permute.xlu1 %v998_v10  ;;  %888 = vset.pattern.permute.xlu0 %v999_v11 }
  0x35   : > { %887 = vset.pattern.permute.xlu2 %v1000_v12 }
  0x36   : > { %506 = vperm.xlu2 %887, %v1151_v4  }
  0x3e   : > { %890 = vset.pattern.permute.xlu2 %v1001_v13 }
  0x3f   : > { %475 = vperm.xlu2 %890, %v1151_v4  }
  0x47   : > { %894 = vset.pattern.permute.xlu2 %v995_v0 }
  0x86   : > { %v554_v32 = vpop.permute.xlu2 %553 }
  0x90   : > { %v507_v36 = vpop.permute.xlu2 %506 }
  0x99   : > { %v476_v52 = vpop.permute.xlu2 %475 }
  0x9d   : > { %v307_v14 = vpop.permute.xlu0 %306 }
  0x9e   : > { %v483_v23 = vpop.permute.xlu1 %482 }
  0xb0   : > { %v339_v15 = vpop.f32.mrf.mxu0  ;;  %v359_v16 = vpop.f32.mrf.mxu1 }
  0xb1   : > { %v340_v17 = vadd.f32 %v339_v15, %v307_v14  ;;  %v360_v18 = vadd.f32 %v359_v16, %v307_v14 }
  0xb3   : > { %v362_v19 = vmax.f32 %v340_v17, 0.0  ;;  %v363_v20 = vmax.f32 %v360_v18, 0.0 }
  0xb5   : > { %369 = vrot.lane.b32.xlu1 %v363_v20, %s1002_s11  ;;  %367 = vrot.lane.b32.xlu0 %v362_v19, %s1002_s11 }
  0xbd   : > { %413 = vperm.xlu1 %889, %v1151_v4   ;;  %577 = vperm.xlu0 %888, %v1151_v4  }
  0xc5   : > { %891 = vset.pattern.permute.xlu1 %v1003_v21  ;;  %893 = vset.pattern.permute.xlu0 %v995_v0 }
  0xc6   : > { %436 = vperm.xlu1 %891, %v1151_v4  }
  0xce   : > { %892 = vset.pattern.permute.xlu1 %v1004_v22 }
  0xcf   : > { %546 = vperm.xlu1 %892, %v1151_v4  }
 0x127   : > { %v370_v24 = vpop.permute.xlu1 %369  ;;  %v368_v25 = vpop.permute.xlu0 %367 }
 0x128   : > { %v1168_v26 = vsel %vm371_vm2, %v370_v24, 0.0  ;;  %v1170_v27 = vsel %vm371_vm2, %v368_v25, %v370_v24  ;;  %v1172_v28 = vsel %vm371_vm2, 0.0, %v368_v25 }
 0x129   : > { %v487_v29 = vmul.f32 %v483_v23, %v1168_v26  ;;  %v485_v30 = vmul.f32 %v483_v23, %v1172_v28  ;;  %v486_v31 = vmul.f32 %v483_v23, %v1170_v27  ;;  %v558_v33 = vmul.f32 %v554_v32, %v1168_v26 }
 0x12a   : > { %v556_v34 = vmul.f32 %v554_v32, %v1172_v28  ;;  %v557_v35 = vmul.f32 %v554_v32, %v1170_v27  ;;  %v511_v37 = vmul.f32 %v507_v36, %v1168_v26  ;;  %v509_v38 = vmul.f32 %v507_v36, %v1172_v28 }
 0x12b   : > { %495 = vrot.lane.b32.xlu0 %v487_v29, %s1005_s18  ;;  %491 = vrot.lane.b32.xlu1 %v485_v30, %s1005_s18  ;;  %v510_v39 = vmul.f32 %v507_v36, %v1170_v27  ;;  %v480_v62 = vmul.f32 %v476_v52, %v1168_v26  ;;  %v478_v5 = vmul.f32 %v476_v52, %v1172_v28  ;;  %v639_v30 = vld [vmem:[%s1285_s6] sm:$0xf] }
 0x12c   : > { %493 = vrot.lane.b32.xlu2 %v486_v31, %s1005_s18  ;;  %v479_v22 = vmul.f32 %v476_v52, %v1170_v27 }
 0x12f   : > { %v578_v40 = vpop.permute.xlu0 %577  ;;  %v414_v41 = vpop.permute.xlu1 %413 }
 0x130   : > { %v582_v42 = vmul.f32 %v578_v40, %v1168_v26  ;;  %v417_v43 = vmul.f32 %v414_v41, %v1170_v27  ;;  %v581_v44 = vmul.f32 %v578_v40, %v1170_v27  ;;  %v416_v45 = vmul.f32 %v414_v41, %v1172_v28 }
 0x131   : > { %v580_v46 = vmul.f32 %v578_v40, %v1172_v28  ;;  %v418_v49 = vmul.f32 %v414_v41, %v1168_v26 }
 0x133   : > { %566 = vrot.lane.b32.xlu0 %v558_v33, %s1005_s18  ;;  %562 = vrot.lane.b32.xlu1 %v556_v34, %s1005_s18 }
 0x134   : > { %564 = vrot.lane.b32.xlu2 %v557_v35, %s1005_s18 }
 0x138   : > { %v437_v47 = vpop.permute.xlu1 %436 }
 0x139   : > { %v441_v48 = vmul.f32 %v437_v47, %v1168_v26  ;;  %v439_v50 = vmul.f32 %v437_v47, %v1172_v28  ;;  %v440_v51 = vmul.f32 %v437_v47, %v1170_v27 }
 0x13b   : > { %519 = vrot.lane.b32.xlu0 %v511_v37, %s1006_s19  ;;  %515 = vrot.lane.b32.xlu1 %v509_v38, %s1006_s19 }
 0x13c   : > { %517 = vrot.lane.b32.xlu2 %v510_v39, %s1006_s19 }
 0x141   : > { %v547_v55 = vpop.permute.xlu1 %546 }
 0x142   : > { %v551_v6 = vmul.f32 %v547_v55, %v1168_v26  ;;  %v550_v8 = vmul.f32 %v547_v55, %v1170_v27  ;;  %v549_v20 = vmul.f32 %v547_v55, %v1172_v28 }
 0x143   : > { %590 = vrot.lane.b32.xlu0 %v582_v42, %s1006_s19  ;;  %424 = vrot.lane.b32.xlu1 %v417_v43, %s1005_s18  ;;  %v630_v42 = vld [vmem:[%s1283_s4] sm:$0xf] }
 0x144   : > { %588 = vrot.lane.b32.xlu2 %v581_v44, %s1006_s19 }
 0x14b   : > { %407 = vperm.xlu0 %893, %v1151_v4   ;;  %422 = vrot.lane.b32.xlu1 %v416_v45, %s1005_s18 }
 0x14c   : > { %586 = vrot.lane.b32.xlu2 %v580_v46, %s1006_s19 }
 0x153   : > { %449 = vrot.lane.b32.xlu0 %v441_v48, %s1006_s19  ;;  %445 = vrot.lane.b32.xlu1 %v439_v50, %s1006_s19 }
 0x154   : > { %426 = vrot.lane.b32.xlu2 %v418_v49, %s1005_s18 }
 0x15c   : > { %447 = vrot.lane.b32.xlu2 %v440_v51, %s1006_s19  ;;  %s722_s19 = scalar_lea.hbm %s1286_s7, %s821_s17 }
 0x186   : > { %v494_v53 = vpop.permute.xlu2 %493 }
 0x18e   : > { %v565_v54 = vpop.permute.xlu2 %564 }
 0x196   : > { %v518_v56 = vpop.permute.xlu2 %517 }
 0x19d   : > { %v496_v57 = vpop.permute.xlu0 %495  ;;  %v492_v58 = vpop.permute.xlu1 %491 }
 0x19e   : > { %v589_v61 = vpop.permute.xlu2 %588  ;;  %v504_v63 = vadd.f32 %v496_v57, %v480_v62  ;;  %v497_v3 = vsel %vm428_vm3, %v492_v58, %v494_v53  ;;  %v498_v21 = vsel %vm428_vm3, %v494_v53, %v496_v57 }
 0x19f   : > { %v502_v10 = vadd.f32 %v497_v3, %v478_v5  ;;  %v503_v26 = vadd.f32 %v498_v21, %v479_v22  ;;  %v638_v5 = vld [vmem:[%s1284_s5] sm:$0xf] }
 0x1a5   : > { %v567_v59 = vpop.permute.xlu0 %566  ;;  %v563_v60 = vpop.permute.xlu1 %562 }
 0x1a6   : > { %v587_v4 = vpop.permute.xlu2 %586  ;;  %v569_v7 = vsel %vm428_vm3, %v565_v54, %v567_v59  ;;  %v575_v11 = vadd.f32 %v567_v59, %v551_v6  ;;  %v568_v19 = vsel %vm428_vm3, %v563_v60, %v565_v54 }
 0x1a7   : > { %v574_v12 = vadd.f32 %v569_v7, %v550_v8  ;;  %v573_v23 = vadd.f32 %v568_v19, %v549_v20  ;;  %v592_v31 = vsel %vm451_vm4, %v587_v4, %v589_v61 }
 0x1a9   : > { %v597_v34 = vadd.f32 %v592_v31, %v573_v23 }
 0x1ad   : > { %v520_v0 = vpop.permute.xlu0 %519  ;;  %v516_v1 = vpop.permute.xlu1 %515 }
 0x1ae   : > { %v528_v2 = vadd.f32 %v520_v0, %v504_v63  ;;  %v521_v9 = vsel %vm451_vm4, %v516_v1, %v518_v56  ;;  %v427_v24 = vpop.permute.xlu2 %426  ;;  %v522_v25 = vsel %vm451_vm4, %v518_v56, %v520_v0 }
 0x1af   : > { %v526_v14 = vadd.f32 %v521_v9, %v502_v10  ;;  %v527_v32 = vadd.f32 %v522_v25, %v503_v26 }
 0x1b0   : > { %536 = vrot.lane.b32.xlu0 %v528_v2, %s1007_s15 }
 0x1b5   : > { %v591_v13 = vpop.permute.xlu0 %590  ;;  %v425_v15 = vpop.permute.xlu1 %424 }
 0x1b6   : > { %v593_v16 = vsel %vm451_vm4, %v589_v61, %v591_v13  ;;  %v599_v17 = vadd.f32 %v591_v13, %v575_v11  ;;  %v430_v38 = vsel %vm428_vm3, %v425_v15, %v427_v24  ;;  %v448_v39 = vpop.permute.xlu2 %447 }
 0x1b7   : > { %v598_v18 = vadd.f32 %v593_v16, %v574_v12  ;;  %v698_v16 = vld.sshfl [vmem:[#allocation1] sm:$0xff pattern:$0x75316420] }
 0x1b8   : > { %532 = vrot.lane.b32.xlu0 %v526_v14, %s1007_s15  ;;  %619 = vrot.lane.b32.xlu2 %v599_v17, %s1008_s20  ;;  %v699_v14 = vld.sshfl [vmem:[#allocation1 + $0x8] sm:$0xff pattern:$0x75316420] }
 0x1b9   : > { %617 = vrot.lane.b32.xlu1 %v598_v18, %s1008_s20 }
 0x1bd   : > { %v408_v29 = vpop.permute.xlu0 %407  ;;  %v423_v33 = vpop.permute.xlu1 %422 }
 0x1be   : > { %v411_v35 = vmul.f32 %v408_v29, %v1170_v27  ;;  %v410_v36 = vmul.f32 %v408_v29, %v1172_v28  ;;  %v429_v37 = vsel %vm428_vm3, %v423_v33, %v425_v15  ;;  %v378_v28 = vlaneseq }
 0x1bf   : > { %v702_v15 = vrot.slane %v699_v14, 4 }
 0x1c0   : > { %642 = vperm.xlu0 %893, %v639_v30   ;;  %534 = vrot.lane.b32.xlu2 %v527_v32, %s1007_s15  ;;  %v434_v40 = vadd.f32 %v430_v38, %v411_v35  ;;  %v433_v43 = vadd.f32 %v429_v37, %v410_v36  ;;  %v379_v48 = vand.u32 127, %v378_v28  ;;  %s724_s15 = sshll.u32 %s298_s12, 4  ;;  %s725_s15 = int_to_ptr.vmem [resolvable:$true] %s724_s15 }
 0x1c1   : > { %615 = vrot.lane.b32.xlu1 %v597_v34, %s1008_s20  ;;  %v704_v17 = vsel %vm317_vm0, %v698_v16, %v702_v15  ;;  %s726_s20 = sshll.u32 %s722_s19, 4  ;;  %s727_s20 = int_to_ptr.hbm [resolvable:$true] %s726_s20 }
 0x1c2   : > { %v380_v50 = vadd.s32 128, %v379_v48  ;;  %v385_v56 = vand.u32 15, %v379_v48  ;;  %708 = vst [vmem:[%s298_s12] sm:$0xff] %v704_v17  ;;  %s939_s9 = sshra.s32 %s727_s20, 4  ;;  %s940_s9 = int_to_ptr.hbm [resolvable:$true] %s939_s9 }
 0x1c3   : > { %s941_s28 = scalar_lea.hbm %s940_s9, 16  ;;  %p946_p0 = scmp.lt.s32.totalorder %s940_s9, %s1286_s7 }
 0x1c4   : > { %v392_v51 = vand.u32 15, %v380_v50  ;;  %v458_v61 = vadd.s32 4294967295, %v385_v56  ;;  %v600_v3 = vadd.s32 1, %v385_v56  ;;  %p942_p6 = scmp.ne.s32.totalorder %s940_s9, %s941_s28  ;;  %p947_p1 = scmp.lt.s32.totalorder %s945_s23, %s941_s28 }
 0x1c5   : > { %v450_v41 = vpop.permute.xlu0 %449  ;;  %v446_v44 = vpop.permute.xlu1 %445 }
 0x1c6   : > { %v453_v45 = vsel %vm451_vm4, %v448_v39, %v450_v41  ;;  %v452_v27 = vsel %vm451_vm4, %v446_v44, %v448_v39  ;;  %v459_v52 = vadd.s32 4294967295, %v392_v51  ;;  %v601_v55 = vadd.s32 1, %v392_v51  ;;  %p943_p9 = pnand %p942_p6, %p1099_p11  ;;  %p948_p3 = por %p947_p1, %p946_p0 }
 0x1c7   : > { %v457_v46 = vadd.f32 %v453_v45, %v434_v40  ;;  %v456_v47 = vadd.f32 %v452_v27, %v433_v43  ;;  %vm460_vm9 = vcmp.ge.s32.totalorder %v458_v61, 0  ;;  %vm604_vm10 = vcmp.lt.s32.totalorder %v600_v3, 16 }
 0x1c8   : > { %633 = vperm.xlu2 %894, %v630_v42   ;;  %vm461_vm6 = vcmp.ge.s32.totalorder %v459_v52, 0  ;;  %vm605_vm8 = vcmp.lt.s32.totalorder %v601_v55, 16  ;;  %p944_p13 = pneg %p943_p9 }
 0x1c9   : > { %v471_v58 = vsel %vm461_vm6, %v457_v46, 0.0  ;;  %v470_v7 = vsel %vm460_vm9, %v456_v47, 0.0 }
 0x1ca   : > { %p949_p4 = pnand %p948_p3, %p944_p13 }
 0x212   : > { %v620_v49 = vpop.permute.xlu2 %619 }
 0x21a   : > { %v535_v54 = vpop.permute.xlu2 %534 }
 0x222   : > { %v537_v53 = vpop.permute.xlu0 %536  ;;  %v634_v0 = vpop.permute.xlu2 %633 }
 0x223   : > { %v540_v57 = vsel %vm538_vm5, %v535_v54, %v537_v53 }
 0x224   : > { %v544_v60 = vadd.f32 %v540_v57, %v471_v58 }
 0x22a   : > { %v533_v1 = vpop.permute.xlu0 %532 }
 0x22b   : > { %v618_v59 = vpop.permute.xlu1 %617  ;;  %v539_v6 = vsel %vm538_vm5, %v533_v1, %v535_v54 }
 0x22c   : > { %v623_v62 = vsel %vm621_vm7, %v618_v59, %v620_v49  ;;  %v543_v9 = vadd.f32 %v539_v6, %v470_v7 }
 0x22d   : > { %v627_v63 = vsel %vm605_vm8, %v623_v62, 0.0 }
 0x22e   : > { %v629_v2 = vadd.f32 %v627_v63, %v544_v60 }
 0x230   : > { %v637_v4 = vadd.f32 %v634_v0, %v629_v2 }
 0x232   : > { %813 = vmatpush.msk.msra.mxu3 %vm317_vm0, %v637_v4  ;;  %v643_v19 = vpop.permute.xlu0 %642 }
 0x233   : > { %v616_v8 = vpop.permute.xlu1 %615  ;;  %814 = vmatmul.msk.f32.vlgmr.msra.gmra.mxu3 %vm313_vm1, %v638_v5 }
 0x234   : > { %v622_v10 = vsel %vm621_vm7, %v616_v8, %v618_v59 }
 0x235   : > { %v626_v11 = vsel %vm604_vm10, %v622_v10, 0.0 }
 0x236   : > { %v628_v12 = vadd.f32 %v626_v11, %v543_v9 }
 0x238   : > { %v636_v13 = vadd.f32 %v634_v0, %v628_v12 }
 0x23a   : > { %811 = vmatpush.msk.msra.mxu2 %vm317_vm0, %v636_v13 }
 0x23b   : > { %812 = vmatmul.msk.f32.vlgmr.msra.gmra.mxu2 %vm313_vm1, %v638_v5 }
 0x2b6   : > { %v691_v18 = vpop.f32.mrf.mxu3 }
 0x2b7   : > { %v692_v20 = vadd.f32 %v691_v18, %v643_v19 }
 0x2b9   : > { %v695_v21 = vmax.f32 %v692_v20, 0.0 }
 0x2bb   : > { %v703_v24 = vrot.slane %v695_v21, 4 }
 0x2be   : > { %v671_v22 = vpop.f32.mrf.mxu2 }
 0x2bf   : > { %v672_v23 = vadd.f32 %v671_v22, %v643_v19 }
 0x2c1   : > { %v694_v25 = vmax.f32 %v672_v23, 0.0 }
 0x2c3   : > { %v705_v26 = vsel %vm317_vm0, %v694_v25, %v703_v24 }
 0x2c4   : > { %709 = vst [vmem:[%s298_s12 + $0x8] sm:$0xff] %v705_v26 }
 0x2c5   : > { %952 = shalt.err (!%p949_p4)
}
 0x2c6   : > { %824 = dma.vmem_to_hbm [thread:$0]  (%p1099_p11), %s725_s15, 256, %s727_s20, %s711_s10  }
 0x2c7 PF: > { %s738_s22 = sand.u32 1, %s979_s24   ;;  %p1293_p7 = scmp.ge.s32.totalorder %s991_s27, 2 }
 0x2c8   : > { %s739_s12 = scalar_lea.sflag [#allocation4], %s738_s22 }
 0x2c9   : > { %p831_p5 = pnand %p1293_p7, %p1103_p12 }
 0x2cb   : > { %p832_p8 = pneg %p831_p5 }
 0x2cd   : > { %974 = dma.done.wait (%p832_p8), %s739_s12, 256  }
 0x2ce   : > { %976 = vsyncadd (%p832_p8), %s739_s12, 4294967040  ;;  %s1294_s17 = sld [smem:[#allocation8_spill]]  ;;  %p20_p10 = scmp.ge.s32.totalorder %s1074_s30, 4  }
 0x2cf   : > { %s1295_s24 = smov %s983_s25  ;;  %s1296_s25 = smov %s987_s26 }
 0x2d0   : > { %s1298_s27 = smov %s1074_s30  ;;  %22 = sbr.rel (!%p20_p10) target bundleno = 5 (0x5), region = 94 }
 0x2d4   : > { %s1297_s26 = smov %s1294_s17 }
 0x2d5   :  { %745 = vsyncpa [#allocation3], 1 }
 0x2d6   :  { %747 = vsyncpa [#allocation3 + $0x1], 1 }
 0x2d7   :  { %748 = vsyncpa [#allocation4], 1 }
 0x2d8   :  { %750 = vsyncpa [#allocation4 + $0x1], 1 }

</bundles_post_ra>
